<compile_context>
chip_gen: v5e
topology: v5e:2x2
jax: 0.10.0
libtpu: 0.0.40
codegen_flags: <defaults>
</compile_context>

<pallas_src>
import jax
import jax.numpy as jnp
from jax import lax
from jax.experimental import pallas as pl
from jax.experimental.pallas import tpu as pltpu

HIDDEN_SIZE = 32
NUM_LAYERS = 1


def _round_up(x, m):
    return (x + m - 1) // m * m


def _encoder_gru_kernel(idx_ref,     # SMEM: (T, Lmax) int32 item ids (padded with valid id 0)
                        len_ref,     # SMEM: (T,)  int32 basket lengths
                        emb_ref,     # VMEM: (V_pad, H) embedding table (resident)
                        wi_ref,      # VMEM: (H, 3H) fused input weights (1/H folded in)
                        wh_ref,      # VMEM: (H, 3H) fused hidden weights
                        bi_ref,      # VMEM: (1, 3H) [b_ir+b_hr, b_iz+b_hz, b_in]
                        bhn_ref,     # VMEM: (1, H)  b_hn
                        h0_ref,      # VMEM: (1, H)  initial hidden
                        out_ref,     # VMEM out: (T_pad, H) per-step hidden states
                        x_scr,       # VMEM scratch: (T_pad, H) embedding sums
                        gi_scr,      # VMEM scratch: (T_pad, 3H) input-side gates
                        h_scr):      # VMEM scratch: (1, H) carried hidden
    H = h0_ref.shape[1]
    T, Lmax = idx_ref.shape

    out_ref[...] = jnp.zeros_like(out_ref)   # padded rows stay defined
    x_scr[...] = jnp.zeros_like(x_scr)

    # ---- Phase 1: masked embedding sums for every step (gather from VMEM). ----
    @pl.loop(0, T)
    def _(t):
        n_valid = len_ref[t]
        acc = jnp.zeros((1, H), jnp.float32)
        for l in range(Lmax):                                  # Lmax static & small
            row = emb_ref[pl.ds(idx_ref[t, l], 1), :]          # in-VMEM dynamic row load
            acc = acc + jnp.where(l < n_valid, row, jnp.zeros_like(row))
        x_scr[pl.ds(t, 1), :] = acc

    # ---- Phase 2: one batched MXU pass for all input-side gates. ----
    #   GI = X @ W_i + [b_ir+b_hr, b_iz+b_hz, b_in]   (1/H already folded into W_i)
    gi_scr[...] = (jnp.dot(x_scr[...], wi_ref[...],
                           preferred_element_type=jnp.float32) + bi_ref[...])

    # ---- Phase 3: sequential GRU recurrence (only gh depends on h). ----
    h_scr[...] = h0_ref[...]

    @pl.loop(0, T)
    def _(t):
        h = h_scr[...]
        gi = gi_scr[pl.ds(t, 1), :]                            # (1, 3H)
        gh = jnp.dot(h, wh_ref[...], preferred_element_type=jnp.float32)
        r = jax.nn.sigmoid(gi[:, 0:H] + gh[:, 0:H])
        z = jax.nn.sigmoid(gi[:, H:2 * H] + gh[:, H:2 * H])
        n = jnp.tanh(gi[:, 2 * H:3 * H] + r * (gh[:, 2 * H:3 * H] + bhn_ref[...]))
        h_new = (1.0 - z) * n + z * h
        h_scr[...] = h_new
        out_ref[pl.ds(t, 1), :] = h_new


def encoder_rnn_forward_steps(basket_idx, basket_len, hidden0, params):
    """Run T encoder GRU steps in ONE pallas_call (no grid, time loop in-kernel).

    basket_idx: (T, Lmax) int32, item ids padded with any valid id (e.g. 0)
    basket_len: (T,) int32, number of valid ids per step
    hidden0:    (NUM_LAYERS, 1, H) initial hidden state
    Returns (outputs (T, 1, H), final hidden (NUM_LAYERS, 1, H)).
    """
    T, Lmax = basket_idx.shape
    H = HIDDEN_SIZE
    T_pad = _round_up(max(T, 1), 8)

    emb = params["embedding"].astype(jnp.float32)                       # (V, H)
    V = emb.shape[0]
    V_pad = _round_up(V, 8)
    if V_pad != V:
        emb = jnp.pad(emb, ((0, V_pad - V), (0, 0)))

    # Fused weights, PyTorch gate order r, z, n kept; 1/H (average embedding) folded in.
    w_i = (params["weight_ih"].T * (1.0 / H)).astype(jnp.float32)       # (H, 3H)
    w_h = params["weight_hh"].T.astype(jnp.float32)                     # (H, 3H)
    b_ih = params["bias_ih"].astype(jnp.float32)
    b_hh = params["bias_hh"].astype(jnp.float32)
    b_i = jnp.concatenate([b_ih[0:H] + b_hh[0:H],                       # r (fully fused)
                           b_ih[H:2 * H] + b_hh[H:2 * H],               # z (fully fused)
                           b_ih[2 * H:3 * H]]).reshape(1, 3 * H)        # n: b_in only
    b_hn = b_hh[2 * H:3 * H].reshape(1, H)
    h0 = hidden0.reshape(1, H).astype(jnp.float32)

    # VMEM budget: resident table + small scratches; explicit limit so a large
    # vocab still compiles on v7x (64 MiB physical VMEM).
    table_bytes = int(emb.size) * 4
    vmem_limit = int(min(96 * 1024 * 1024,
                         max(32 * 1024 * 1024, 2 * table_bytes + (4 << 20))))

    out = pl.pallas_call(
        _encoder_gru_kernel,
        out_shape=jax.ShapeDtypeStruct((T_pad, H), jnp.float32),
        in_specs=[
            pl.BlockSpec(memory_space=pltpu.MemorySpace.SMEM),   # basket_idx
            pl.BlockSpec(memory_space=pltpu.MemorySpace.SMEM),   # basket_len
            pl.BlockSpec(memory_space=pltpu.MemorySpace.VMEM),   # embedding (resident)
            pl.BlockSpec(memory_space=pltpu.MemorySpace.VMEM),   # w_i
            pl.BlockSpec(memory_space=pltpu.MemorySpace.VMEM),   # w_h
            pl.BlockSpec(memory_space=pltpu.MemorySpace.VMEM),   # fused biases
            pl.BlockSpec(memory_space=pltpu.MemorySpace.VMEM),   # b_hn
            pl.BlockSpec(memory_space=pltpu.MemorySpace.VMEM),   # h0
        ],
        out_specs=pl.BlockSpec(memory_space=pltpu.MemorySpace.VMEM),
        scratch_shapes=[
            pltpu.VMEM((T_pad, H), jnp.float32),       # X: embedding sums
            pltpu.VMEM((T_pad, 3 * H), jnp.float32),   # GI: batched input gates
            pltpu.VMEM((1, H), jnp.float32),           # carried hidden state
        ],
        compiler_params=pltpu.CompilerParams(vmem_limit_bytes=vmem_limit),
    )(basket_idx.astype(jnp.int32), basket_len.astype(jnp.int32),
      emb, w_i, w_h, b_i, b_hn, h0)

    outs = out[:T].reshape(T, 1, H)
    h_final = out[T - 1].reshape(NUM_LAYERS, 1, H)
    return outs, h_final


def encoder_rnn_forward(basket, hidden, params):
    """Single-step API matching EncoderRNN_new.forward(basket, hidden)."""
    basket = jnp.asarray(basket, jnp.int32).reshape(1, -1)
    lens = jnp.full((1,), basket.shape[1], jnp.int32)
    outs, h_new = encoder_rnn_forward_steps(basket, lens, hidden, params)
    return outs.reshape(1, 1, HIDDEN_SIZE), h_new


# ----------------------------- pure-JAX reference -----------------------------
def _reference_step(idx_row, length, h, params):
    H = HIDDEN_SIZE
    rows = params["embedding"][idx_row]                     # (Lmax, H)
    mask = (jnp.arange(idx_row.shape[0]) < length)[:, None]
    emb_sum = jnp.sum(jnp.where(mask, rows, 0.0), axis=0, keepdims=True)
    x = emb_sum / H                                         # use_average_embedding
    gi = x @ params["weight_ih"].T + params["bias_ih"]
    gh = h @ params["weight_hh"].T + params["bias_hh"]
    r = jax.nn.sigmoid(gi[:, 0:H] + gh[:, 0:H])
    z = jax.nn.sigmoid(gi[:, H:2 * H] + gh[:, H:2 * H])
    n = jnp.tanh(gi[:, 2 * H:] + r * gh[:, 2 * H:])
    return (1.0 - z) * n + z * h


def init_params(key, input_size, hidden_size):
    k_emb, k_wih, k_whh, k_bih, k_bhh = jax.random.split(key, 5)
    bound = 1.0 / jnp.sqrt(hidden_size)
    return {
        # nn.Embedding default init: N(0, 1)
        "embedding": jax.random.normal(k_emb, (input_size, hidden_size), jnp.float32),
        # nn.GRU default init: U(-1/sqrt(H), 1/sqrt(H)), gate order r, z, n
        "weight_ih": jax.random.uniform(k_wih, (3 * hidden_size, hidden_size),
                                        jnp.float32, -bound, bound),
        "weight_hh": jax.random.uniform(k_whh, (3 * hidden_size, hidden_size),
                                        jnp.float32, -bound, bound),
        "bias_ih": jax.random.uniform(k_bih, (3 * hidden_size,),
                                      jnp.float32, -bound, bound),
        "bias_hh": jax.random.uniform(k_bhh, (3 * hidden_size,),
                                      jnp.float32, -bound, bound),
    }
    # TODO(synk): self.reduction (nn.Linear) is unused when use_embedding=1, so it is omitted.


if __name__ == "__main__":
    key = jax.random.PRNGKey(0)
    input_size = 100               # vocabulary size
    T, Lmax = 4, 6                 # 4 encoder steps, baskets padded to 6 items

    k_params, k_idx = jax.random.split(key)
    params = init_params(k_params, input_size, HIDDEN_SIZE)

    lens = jnp.array([5, 3, 6, 4], jnp.int32)
    idx = jax.random.randint(k_idx, (T, Lmax), 0, input_size, jnp.int32)
    # Padding slots hold a valid id (0); they are masked out inside the kernel.
    idx = jnp.where(jnp.arange(Lmax)[None, :] < lens[:, None], idx, 0)

    hidden0 = jnp.zeros((NUM_LAYERS, 1, HIDDEN_SIZE), jnp.float32)   # initHidden()

    # Multi-step call (T module-forwards fused into one pallas_call).
    outs, h_final = encoder_rnn_forward_steps(idx, lens, hidden0, params)
    outs = jax.block_until_ready(outs)
    h_final = jax.block_until_ready(h_final)

    # Reference: iterate the module forward T times in pure JAX.
    h = hidden0.reshape(1, HIDDEN_SIZE)
    ref_list = []
    for t in range(T):
        h = _reference_step(idx[t], lens[t], h, params)
        ref_list.append(h)
    ref_outs = jnp.stack(ref_list).reshape(T, 1, HIDDEN_SIZE)

    assert outs.shape == (T, 1, HIDDEN_SIZE)
    assert h_final.shape == (NUM_LAYERS, 1, HIDDEN_SIZE)
    assert jnp.allclose(outs, ref_outs, atol=1e-5, rtol=1e-5)
    assert jnp.allclose(h_final, ref_outs[-1].reshape(NUM_LAYERS, 1, HIDDEN_SIZE),
                        atol=1e-5, rtol=1e-5)

    # Single-step API, exactly like EncoderRNN_new.forward (duplicates allowed).
    basket = jnp.array([3, 7, 7, 42, 99], jnp.int32)
    out1, h1 = encoder_rnn_forward(basket, hidden0, params)
    out1 = jax.block_until_ready(out1)
    ref1 = _reference_step(basket, jnp.int32(basket.shape[0]),
                           hidden0.reshape(1, HIDDEN_SIZE), params)
    assert out1.shape == (1, 1, HIDDEN_SIZE)
    assert h1.shape == (NUM_LAYERS, 1, HIDDEN_SIZE)
    assert jnp.allclose(out1.reshape(1, HIDDEN_SIZE), ref1, atol=1e-5, rtol=1e-5)
    assert jnp.allclose(h1.reshape(1, HIDDEN_SIZE), ref1, atol=1e-5, rtol=1e-5)

    print("KERNEL_OK")
</pallas_src>

<mosaic_0001>
module attributes {stable_mosaic.version = 11 : i64} {
  func.func @_encoder_gru_kernel(%arg0: memref<4x6xi32, #tpu.memory_space<smem>>, %arg1: memref<4xi32, #tpu.memory_space<smem>>, %arg2: memref<104x32xf32, #tpu.memory_space<vmem>>, %arg3: memref<32x96xf32, #tpu.memory_space<vmem>>, %arg4: memref<32x96xf32, #tpu.memory_space<vmem>>, %arg5: memref<1x96xf32, #tpu.memory_space<vmem>>, %arg6: memref<1x32xf32, #tpu.memory_space<vmem>>, %arg7: memref<1x32xf32, #tpu.memory_space<vmem>>, %arg8: memref<8x32xf32, #tpu.memory_space<vmem>>, %arg9: memref<8x32xf32, #tpu.memory_space<vmem>>, %arg10: memref<8x96xf32, #tpu.memory_space<vmem>>, %arg11: memref<1x32xf32, #tpu.memory_space<vmem>>) attributes {dimension_semantics = [], scalar_prefetch = 0 : i64, scratch_operands = 3 : i64, tpu.core_type = #tpu.core_type<tc>} {
    %cst = arith.constant 0.000000e+00 : f32
    %0 = vector.broadcast %cst : f32 to vector<8x32xf32>
    %c0 = arith.constant 0 : index
    %c0_0 = arith.constant 0 : index
    %1 = vector.load %arg8[%c0, %c0_0] : memref<8x32xf32, #tpu.memory_space<vmem>>, vector<8x32xf32>
    tpu.vector_store %arg8[%c0, %c0_0], %0 {strides = array<i32>} : memref<8x32xf32, #tpu.memory_space<vmem>>, vector<8x32xf32>,
    %cst_1 = arith.constant 0.000000e+00 : f32
    %2 = vector.broadcast %cst_1 : f32 to vector<8x32xf32>
    %c0_2 = arith.constant 0 : index
    %c0_3 = arith.constant 0 : index
    %3 = vector.load %arg9[%c0_2, %c0_3] : memref<8x32xf32, #tpu.memory_space<vmem>>, vector<8x32xf32>
    tpu.vector_store %arg9[%c0_2, %c0_3], %2 {strides = array<i32>} : memref<8x32xf32, #tpu.memory_space<vmem>>, vector<8x32xf32>,
    %c0_i32 = arith.constant 0 : i32
    %c4_i32 = arith.constant 4 : i32
    %4 = arith.addi %c0_i32, %c4_i32 : i32
    %c1_i32 = arith.constant 1 : i32
    scf.for %arg12 = %c0_i32 to %4 step %c1_i32  : i32 {
      %c1_i32_22 = arith.constant 1 : i32
      %15 = arith.muli %arg12, %c1_i32_22 : i32
      %c0_i32_23 = arith.constant 0 : i32
      %16 = arith.addi %c0_i32_23, %15 : i32
      %17 = arith.index_cast %16 : i32 to index
      %18 = memref.load %arg1[%17] : memref<4xi32, #tpu.memory_space<smem>>
      %cst_24 = arith.constant 0.000000e+00 : f32
      %19 = vector.broadcast %cst_24 : f32 to vector<1x32xf32>
      %20 = arith.index_cast %16 : i32 to index
      %c0_25 = arith.constant 0 : index
      %21 = memref.load %arg0[%20, %c0_25] : memref<4x6xi32, #tpu.memory_space<smem>>
      %22 = arith.index_cast %21 : i32 to index
      %c0_26 = arith.constant 0 : index
      %23 = vector.load %arg2[%22, %c0_26] : memref<104x32xf32, #tpu.memory_space<vmem>>, vector<1x32xf32>
      %c0_i32_27 = arith.constant 0 : i32
      %24 = arith.cmpi sgt, %18, %c0_i32_27 : i32
      %cst_28 = arith.constant 0.000000e+00 : f32
      %25 = vector.broadcast %cst_28 : f32 to vector<1x32xf32>
      %26 = arith.select %24, %23, %25 : vector<1x32xf32>
      %27 = arith.addf %19, %26 : vector<1x32xf32>
      %28 = arith.index_cast %16 : i32 to index
      %c1 = arith.constant 1 : index
      %29 = memref.load %arg0[%28, %c1] : memref<4x6xi32, #tpu.memory_space<smem>>
      %30 = arith.index_cast %29 : i32 to index
      %c0_29 = arith.constant 0 : index
      %31 = vector.load %arg2[%30, %c0_29] : memref<104x32xf32, #tpu.memory_space<vmem>>, vector<1x32xf32>
      %c1_i32_30 = arith.constant 1 : i32
      %32 = arith.cmpi sgt, %18, %c1_i32_30 : i32
      %cst_31 = arith.constant 0.000000e+00 : f32
      %33 = vector.broadcast %cst_31 : f32 to vector<1x32xf32>
      %34 = arith.select %32, %31, %33 : vector<1x32xf32>
      %35 = arith.addf %27, %34 : vector<1x32xf32>
      %36 = arith.index_cast %16 : i32 to index
      %c2 = arith.constant 2 : index
      %37 = memref.load %arg0[%36, %c2] : memref<4x6xi32, #tpu.memory_space<smem>>
      %38 = arith.index_cast %37 : i32 to index
      %c0_32 = arith.constant 0 : index
      %39 = vector.load %arg2[%38, %c0_32] : memref<104x32xf32, #tpu.memory_space<vmem>>, vector<1x32xf32>
      %c2_i32 = arith.constant 2 : i32
      %40 = arith.cmpi sgt, %18, %c2_i32 : i32
      %cst_33 = arith.constant 0.000000e+00 : f32
      %41 = vector.broadcast %cst_33 : f32 to vector<1x32xf32>
      %42 = arith.select %40, %39, %41 : vector<1x32xf32>
      %43 = arith.addf %35, %42 : vector<1x32xf32>
      %44 = arith.index_cast %16 : i32 to index
      %c3 = arith.constant 3 : index
      %45 = memref.load %arg0[%44, %c3] : memref<4x6xi32, #tpu.memory_space<smem>>
      %46 = arith.index_cast %45 : i32 to index
      %c0_34 = arith.constant 0 : index
      %47 = vector.load %arg2[%46, %c0_34] : memref<104x32xf32, #tpu.memory_space<vmem>>, vector<1x32xf32>
      %c3_i32 = arith.constant 3 : i32
      %48 = arith.cmpi sgt, %18, %c3_i32 : i32
      %cst_35 = arith.constant 0.000000e+00 : f32
      %49 = vector.broadcast %cst_35 : f32 to vector<1x32xf32>
      %50 = arith.select %48, %47, %49 : vector<1x32xf32>
      %51 = arith.addf %43, %50 : vector<1x32xf32>
      %52 = arith.index_cast %16 : i32 to index
      %c4 = arith.constant 4 : index
      %53 = memref.load %arg0[%52, %c4] : memref<4x6xi32, #tpu.memory_space<smem>>
      %54 = arith.index_cast %53 : i32 to index
      %c0_36 = arith.constant 0 : index
      %55 = vector.load %arg2[%54, %c0_36] : memref<104x32xf32, #tpu.memory_space<vmem>>, vector<1x32xf32>
      %c4_i32_37 = arith.constant 4 : i32
      %56 = arith.cmpi sgt, %18, %c4_i32_37 : i32
      %cst_38 = arith.constant 0.000000e+00 : f32
      %57 = vector.broadcast %cst_38 : f32 to vector<1x32xf32>
      %58 = arith.select %56, %55, %57 : vector<1x32xf32>
      %59 = arith.addf %51, %58 : vector<1x32xf32>
      %60 = arith.index_cast %16 : i32 to index
      %c5 = arith.constant 5 : index
      %61 = memref.load %arg0[%60, %c5] : memref<4x6xi32, #tpu.memory_space<smem>>
      %62 = arith.index_cast %61 : i32 to index
      %c0_39 = arith.constant 0 : index
      %63 = vector.load %arg2[%62, %c0_39] : memref<104x32xf32, #tpu.memory_space<vmem>>, vector<1x32xf32>
      %c5_i32 = arith.constant 5 : i32
      %64 = arith.cmpi sgt, %18, %c5_i32 : i32
      %cst_40 = arith.constant 0.000000e+00 : f32
      %65 = vector.broadcast %cst_40 : f32 to vector<1x32xf32>
      %66 = arith.select %64, %63, %65 : vector<1x32xf32>
      %67 = arith.addf %59, %66 : vector<1x32xf32>
      %68 = arith.index_cast %16 : i32 to index
      %c0_41 = arith.constant 0 : index
      %69 = vector.load %arg9[%68, %c0_41] : memref<8x32xf32, #tpu.memory_space<vmem>>, vector<1x32xf32>
      tpu.vector_store %arg9[%68, %c0_41], %67 {strides = array<i32>} : memref<8x32xf32, #tpu.memory_space<vmem>>, vector<1x32xf32>,
    }
    %c4_i32_4 = arith.constant 4 : i32
    %c0_5 = arith.constant 0 : index
    %c0_6 = arith.constant 0 : index
    %5 = vector.load %arg9[%c0_5, %c0_6] : memref<8x32xf32, #tpu.memory_space<vmem>>, vector<8x32xf32>
    %c0_7 = arith.constant 0 : index
    %c0_8 = arith.constant 0 : index
    %6 = vector.load %arg3[%c0_7, %c0_8] : memref<32x96xf32, #tpu.memory_space<vmem>>, vector<32x96xf32>
    %cst_9 = arith.constant dense<0.000000e+00> : vector<8x96xf32>
    %7 = tpu.matmul %5, %6, %cst_9 {dimension_numbers = #tpu.dot_dimension_numbers<[1], [0], [0], [1], [0, 0, 1, 1], [], []>} : vector<8x32xf32>, vector<32x96xf32>, vector<8x96xf32> -> vector<8x96xf32>
    %c0_10 = arith.constant 0 : index
    %c0_11 = arith.constant 0 : index
    %8 = vector.load %arg5[%c0_10, %c0_11] : memref<1x96xf32, #tpu.memory_space<vmem>>, vector<1x96xf32>
    %9 = vector.broadcast %8 : vector<1x96xf32> to vector<8x96xf32>
    %10 = arith.addf %7, %9 : vector<8x96xf32>
    %c0_12 = arith.constant 0 : index
    %c0_13 = arith.constant 0 : index
    %11 = vector.load %arg10[%c0_12, %c0_13] : memref<8x96xf32, #tpu.memory_space<vmem>>, vector<8x96xf32>
    tpu.vector_store %arg10[%c0_12, %c0_13], %10 {strides = array<i32>} : memref<8x96xf32, #tpu.memory_space<vmem>>, vector<8x96xf32>,
    %c0_14 = arith.constant 0 : index
    %c0_15 = arith.constant 0 : index
    %12 = vector.load %arg7[%c0_14, %c0_15] : memref<1x32xf32, #tpu.memory_space<vmem>>, vector<1x32xf32>
    %c0_16 = arith.constant 0 : index
    %c0_17 = arith.constant 0 : index
    %13 = vector.load %arg11[%c0_16, %c0_17] : memref<1x32xf32, #tpu.memory_space<vmem>>, vector<1x32xf32>
    tpu.vector_store %arg11[%c0_16, %c0_17], %12 {strides = array<i32>} : memref<1x32xf32, #tpu.memory_space<vmem>>, vector<1x32xf32>,
    %c0_i32_18 = arith.constant 0 : i32
    %c4_i32_19 = arith.constant 4 : i32
    %14 = arith.addi %c0_i32_18, %c4_i32_19 : i32
    %c1_i32_20 = arith.constant 1 : i32
    scf.for %arg12 = %c0_i32_18 to %14 step %c1_i32_20  : i32 {
      %c1_i32_22 = arith.constant 1 : i32
      %15 = arith.muli %arg12, %c1_i32_22 : i32
      %c0_i32_23 = arith.constant 0 : i32
      %16 = arith.addi %c0_i32_23, %15 : i32
      %c0_24 = arith.constant 0 : index
      %c0_25 = arith.constant 0 : index
      %17 = vector.load %arg11[%c0_24, %c0_25] : memref<1x32xf32, #tpu.memory_space<vmem>>, vector<1x32xf32>
      %18 = arith.index_cast %16 : i32 to index
      %c0_26 = arith.constant 0 : index
      %19 = vector.load %arg10[%18, %c0_26] : memref<8x96xf32, #tpu.memory_space<vmem>>, vector<1x96xf32>
      %c0_27 = arith.constant 0 : index
      %c0_28 = arith.constant 0 : index
      %20 = vector.load %arg4[%c0_27, %c0_28] : memref<32x96xf32, #tpu.memory_space<vmem>>, vector<32x96xf32>
      %cst_29 = arith.constant dense<0.000000e+00> : vector<1x96xf32>
      %21 = tpu.matmul %17, %20, %cst_29 {dimension_numbers = #tpu.dot_dimension_numbers<[1], [0], [0], [1], [0, 0, 1, 1], [], []>} : vector<1x32xf32>, vector<32x96xf32>, vector<1x96xf32> -> vector<1x96xf32>
      %22 = vector.extract_strided_slice %19 {offsets = [0, 0], sizes = [1, 32], strides = [1, 1]} : vector<1x96xf32> to vector<1x32xf32>
      %23 = vector.extract_strided_slice %21 {offsets = [0, 0], sizes = [1, 32], strides = [1, 1]} : vector<1x96xf32> to vector<1x32xf32>
      %24 = arith.addf %22, %23 : vector<1x32xf32>
      %25 = arith.negf %24 : vector<1x32xf32>
      %26 = math.exp %25 : vector<1x32xf32>
      %cst_30 = arith.constant 1.000000e+00 : f32
      %27 = vector.broadcast %cst_30 : f32 to vector<1x32xf32>
      %28 = arith.addf %27, %26 : vector<1x32xf32>
      %29 = arith.divf %27, %28 : vector<1x32xf32>
      %30 = vector.extract_strided_slice %19 {offsets = [0, 32], sizes = [1, 32], strides = [1, 1]} : vector<1x96xf32> to vector<1x32xf32>
      %31 = vector.extract_strided_slice %21 {offsets = [0, 32], sizes = [1, 32], strides = [1, 1]} : vector<1x96xf32> to vector<1x32xf32>
      %32 = arith.addf %30, %31 : vector<1x32xf32>
      %33 = arith.negf %32 : vector<1x32xf32>
      %34 = math.exp %33 : vector<1x32xf32>
      %cst_31 = arith.constant 1.000000e+00 : f32
      %35 = vector.broadcast %cst_31 : f32 to vector<1x32xf32>
      %36 = arith.addf %35, %34 : vector<1x32xf32>
      %37 = arith.divf %35, %36 : vector<1x32xf32>
      %38 = vector.extract_strided_slice %19 {offsets = [0, 64], sizes = [1, 32], strides = [1, 1]} : vector<1x96xf32> to vector<1x32xf32>
      %39 = vector.extract_strided_slice %21 {offsets = [0, 64], sizes = [1, 32], strides = [1, 1]} : vector<1x96xf32> to vector<1x32xf32>
      %c0_32 = arith.constant 0 : index
      %c0_33 = arith.constant 0 : index
      %40 = vector.load %arg6[%c0_32, %c0_33] : memref<1x32xf32, #tpu.memory_space<vmem>>, vector<1x32xf32>
      %41 = arith.addf %39, %40 : vector<1x32xf32>
      %42 = arith.mulf %29, %41 : vector<1x32xf32>
      %43 = arith.addf %38, %42 : vector<1x32xf32>
      %44 = math.tanh %43 : vector<1x32xf32>
      %cst_34 = arith.constant 1.000000e+00 : f32
      %45 = vector.broadcast %cst_34 : f32 to vector<1x32xf32>
      %46 = arith.subf %45, %37 : vector<1x32xf32>
      %47 = arith.mulf %46, %44 : vector<1x32xf32>
      %48 = arith.mulf %37, %17 : vector<1x32xf32>
      %49 = arith.addf %47, %48 : vector<1x32xf32>
      %c0_35 = arith.constant 0 : index
      %c0_36 = arith.constant 0 : index
      %50 = vector.load %arg11[%c0_35, %c0_36] : memref<1x32xf32, #tpu.memory_space<vmem>>, vector<1x32xf32>
      tpu.vector_store %arg11[%c0_35, %c0_36], %49 {strides = array<i32>} : memref<1x32xf32, #tpu.memory_space<vmem>>, vector<1x32xf32>,
      %51 = arith.index_cast %16 : i32 to index
      %c0_37 = arith.constant 0 : index
      %52 = vector.load %arg8[%51, %c0_37] : memref<8x32xf32, #tpu.memory_space<vmem>>, vector<1x32xf32>
      tpu.vector_store %arg8[%51, %c0_37], %49 {strides = array<i32>} : memref<8x32xf32, #tpu.memory_space<vmem>>, vector<1x32xf32>,
    }
    %c4_i32_21 = arith.constant 4 : i32
    return
  }
}

</mosaic_0001>

<bundles_post_ra>
// kernel: tpu_custom_call.1
= control target key start
LH: loop header
LB: loop body
LE: loop exit
PB: predicated region body
PF: predicated region fallthrough
CT: control target
= control target key end

     0   :  { %13 = vsyncpa [#allocation7], 0  ;;  %s569_s0 = inlined_call_operand.vmem [shape: s32[4,6], index: 0, kind: input, shape index: {}]   ;;  %s570_s1 = inlined_call_operand.vmem [shape: s32[4], index: 1, kind: input, shape index: {}]   ;;  %s571_s2 = inlined_call_operand.vmem [shape: f32[104,32], index: 2, kind: input, shape index: {}]   ;;  %s572_s3 = inlined_call_operand.vmem [shape: f32[32,96], index: 3, kind: input, shape index: {}]   ;;  %s573_s4 = inlined_call_operand.vmem [shape: f32[32,96], index: 4, kind: input, shape index: {}]   ;;  %s574_s5 = inlined_call_operand.vmem [shape: f32[1,96], index: 5, kind: input, shape index: {}]   ;;  %s575_s6 = inlined_call_operand.vmem [shape: f32[1,32], index: 6, kind: input, shape index: {}]   ;;  %s576_s7 = inlined_call_operand.vmem [shape: f32[1,32], index: 7, kind: input, shape index: {}]   ;;  %s577_s8 = inlined_call_operand.hbm [shape: f32[8,32], index: 8, kind: output, shape index: {}]  }
   0x1   :  { %14 = vsyncpa [#allocation9], 0 }
   0x2   :  { %15 = vsyncpa [#allocation6], 0  ;;  %s21_s29 = sshll.u32 %s569_s0, 4  ;;  %s30_s10 = sshll.u32 %s570_s1, 4  ;;  %s22_s29 = int_to_ptr.vmem [resolvable:$true] %s21_s29  ;;  %s31_s10 = int_to_ptr.vmem [resolvable:$true] %s30_s10 }
   0x3   :  { %s401_s11 = smov [#allocation5]   ;;  %s402_s12 = smov [#allocation8]  }
   0x4   :  { %24 = dma.vmem_to_smem %s22_s29, 64, %s401_s11, [#allocation7]  }
   0x5   :  { %33 = dma.vmem_to_smem %s31_s10, 16, %s402_s12, [#allocation9]  }
   0x6   :  { %387 = dma.done.wait [#allocation7], 64  }
   0x7   :  { %388 = vsyncadd [#allocation7], 4294967232 }
   0x8   :  { %389 = dma.done.wait [#allocation9], 16  }
   0x9   :  { %390 = vsyncadd [#allocation9], 4294967280 }
   0xa   :  { %54 = sfence }
   0xb   :  { %vm55_vm0 = vcmask 261120   ;;  %v403_v0 = vmov 0.0   ;;  %s461_s0 = smov 0  }
   0xc   :  { %56 = vst.msk [vmem:[#allocation10] sm:$0xff] %vm55_vm0, %v403_v0 }
   0xd   :  { %57 = vst.msk [vmem:[#allocation2] sm:$0xff] %vm55_vm0, %v403_v0 }
   0xe LB: > { %s467_s1 = sld [smem:[#allocation8 + %s395_s0]]  ;;  %s470_s13 = sshll.u32 %s395_s0, 7  ;;  %vm126_vm7 = vcmask 253952   ;;  %s395_s0 = sphi %s461_s0, %s63_s0  }
   0xf   : > { %s66_s14 = sld [smem:[#allocation5 + %s470_s13]]  ;;  %s75_s15 = sadd.s32 1, %s470_s13 }
  0x10   : > { %s76_s16 = sld [smem:[#allocation5 + %s75_s15]]  ;;  %s85_s17 = sadd.s32 2, %s470_s13 }
  0x11   : > { %s86_s18 = sld [smem:[#allocation5 + %s85_s17]]  ;;  %s95_s19 = sadd.s32 3, %s470_s13 }
  0x12   : > { %s476_s20 = sld [smem:[#allocation5 + %s95_s19]]  ;;  %s105_s21 = sadd.s32 4, %s470_s13 }
  0x13   : > { %s479_s22 = sld [smem:[#allocation5 + %s105_s21]]  ;;  %s115_s23 = sadd.s32 5, %s470_s13 }
  0x14   : > { %p69_p0 = scmp.gt.s32.totalorder %s467_s1, 0  ;;  %p79_p1 = scmp.gt.s32.totalorder %s467_s1, 1 }
  0x15   : > { %s67_s26 = scalar_lea.vmem %s571_s2, %s66_s14  ;;  %p89_p2 = scmp.gt.s32.totalorder %s467_s1, 2 }
  0x16   : > { %s70_s27 = scalar_select %p69_p0, 1, 0  ;;  %v68_v1 = vld [vmem:[%s67_s26] sm:$0x1] }
  0x17   : > { %s77_s30 = scalar_lea.vmem %s571_s2, %s76_s16  ;;  %s87_s11 = scalar_lea.vmem %s571_s2, %s86_s18 }
  0x18   : > { %v71_v2 = vstv %s70_s27  ;;  %s80_s12 = scalar_select %p79_p1, 1, 0  ;;  %v78_v3 = vld [vmem:[%s77_s30] sm:$0x1] }
  0x19   : > { %vm72_vm1 = vcmp.eq.s32.totalorder %v71_v2, 1  ;;  %s90_s15 = scalar_select %p89_p2, 1, 0  ;;  %v88_v6 = vld [vmem:[%s87_s11] sm:$0x1] }
  0x1a   : > { %v73_v4 = vsel %vm72_vm1, %v68_v1, 0.0  ;;  %v81_v5 = vstv %s80_s12  ;;  %s97_s19 = scalar_lea.vmem %s571_s2, %s476_s20  ;;  %p99_p3 = scmp.gt.s32.totalorder %s467_s1, 3 }
  0x1b   : > { %vm82_vm2 = vcmp.eq.s32.totalorder %v81_v5, 1  ;;  %v91_v7 = vstv %s90_s15  ;;  %s107_s18 = scalar_lea.vmem %s571_s2, %s479_s22  ;;  %p109_p4 = scmp.gt.s32.totalorder %s467_s1, 4  ;;  %v98_v11 = vld [vmem:[%s97_s19] sm:$0x1] }
  0x1c   : > { %v83_v8 = vsel %vm82_vm2, %v78_v3, 0.0  ;;  %vm92_vm3 = vcmp.eq.s32.totalorder %v91_v7, 1  ;;  %s100_s24 = scalar_select %p99_p3, 1, 0  ;;  %v108_v13 = vld [vmem:[%s107_s18] sm:$0x1] }
  0x1d   : > { %v84_v9 = vadd.f32 %v83_v8, %v73_v4  ;;  %v93_v10 = vsel %vm92_vm3, %v88_v6, 0.0  ;;  %s110_s25 = scalar_select %p109_p4, 1, 0 }
  0x1e   : > { %v101_v12 = vstv %s100_s24  ;;  %s116_s20 = sld [smem:[#allocation5 + %s115_s23]]  ;;  %p119_p5 = scmp.gt.s32.totalorder %s467_s1, 5 }
  0x1f   : > { %v94_v14 = vadd.f32 %v93_v10, %v84_v9  ;;  %vm102_vm4 = vcmp.eq.s32.totalorder %v101_v12, 1  ;;  %v111_v15 = vstv %s110_s25  ;;  %s125_s1 = scalar_lea.vmem [#allocation2], %s395_s0  ;;  %s63_s0 = sadd.s32 1, %s395_s0  }
  0x20   : > { %v103_v16 = vsel %vm102_vm4, %v98_v11, 0.0  ;;  %vm112_vm5 = vcmp.eq.s32.totalorder %v111_v15, 1  ;;  %s120_s22 = scalar_select %p119_p5, 1, 0 }
  0x21   : > { %v104_v17 = vadd.f32 %v103_v16, %v94_v14  ;;  %v113_v18 = vsel %vm112_vm5, %v108_v13, 0.0  ;;  %p60_p6 = scmp.ge.s32.totalorder %s63_s0, 4  }
  0x22   : > { %v121_v19 = vstv %s120_s22  ;;  %v132_v24 = vld [vmem:[%s572_s3 + $0x18] sm:$0xff] (%p60_p6)  ;;  %v131_v25 = vld [vmem:[%s572_s3 + $0x10] sm:$0xff] (%p60_p6)  ;;  %v130_v26 = vld [vmem:[%s572_s3 + $0x8] sm:$0xff] (%p60_p6)  ;;  %vm160_vm8 = vcmask (%p60_p6), 785408  }
  0x23   : > { %v114_v20 = vadd.f32 %v113_v18, %v104_v17  ;;  %vm122_vm6 = vcmp.eq.s32.totalorder %v121_v19, 1  ;;  %152 = vmatpush.msra.mxu0 (%p60_p6), %v132_v24  ;;  %v129_v27 = vld [vmem:[%s572_s3] sm:$0xff] (%p60_p6)  ;;  %s535_s3 = smov (%p60_p6), 0  }
  0x24   : > { %s117_s28 = scalar_lea.vmem %s571_s2, %s116_s20  ;;  %v162_v29 = vld [vmem:[%s576_s7] sm:$0x1] (%p60_p6) }
  0x25   : > { %v118_v21 = vld [vmem:[%s117_s28] sm:$0x1]  ;;  %62 = sbr.rel (!%p60_p6) target bundleno = 14 (0xe), region = 83  ;;  %153 = vmatpush.msra.mxu0 (%p60_p6), %v131_v25  ;;  %164 = vst.msk [vmem:[#allocation4] sm:$0x1] (%p60_p6), %vm126_vm7, %v162_v29 }
  0x26   : > { %v123_v22 = vsel %vm122_vm6, %v118_v21, 0.0  ;;  %v322_v30 = vld [vmem:[%s574_s5] ss:$0 sm:$0xff] (%p60_p6) }
  0x27   : > { %v124_v23 = vadd.f32 %v123_v22, %v114_v20  ;;  %154 = vmatpush.msra.mxu0 (%p60_p6), %v130_v26 }
  0x29   : > { %127 = vst.msk [vmem:[%s125_s1] sm:$0x1] %vm126_vm7, %v124_v23  ;;  %155 = vmatpush.msra.mxu0 (%p60_p6), %v129_v27 }
  0x30   :  { %v128_v28 = vld [vmem:[#allocation2] sm:$0xff] }
  0x31   :  { %296 = vmatmul.msk.f32.vlgmr.msra.gmra.mxu0 %vm55_vm0, %v128_v28 }
  0xae   :  { %v157_v31 = vpop.f32.mrf.mxu0 }
  0xaf   :  { %v158_v32 = vadd.f32 %v322_v30, %v157_v31 }
  0xb1   :  { %161 = vst.msk [vmem:[#allocation3] sm:$0xff] %vm160_vm8, %v158_v32 }
  0xb2 LB: > { %v177_v33 = vld [vmem:[%s573_s4 + $0x18] sm:$0xff]  ;;  %v176_v34 = vld [vmem:[%s573_s4 + $0x10] sm:$0xff]  ;;  %v175_v35 = vld [vmem:[%s573_s4 + $0x8] sm:$0xff]  ;;  %s404_s22 = smov 64   ;;  %s405_s26 = smov 32   ;;  %s399_s3 = sphi %s535_s3, %s170_s3  }
  0xb3   : > { %193 = vmatpush.msra.mxu0 %v177_v33  ;;  %v323_v36 = vld [vmem:[%s575_s6] ss:$0 sm:$0xff]  ;;  %v324_v37 = vld [vmem:[#allocation4] ss:$0 sm:$0xff]  ;;  %s172_s27 = scalar_lea.vmem [#allocation3], %s399_s3  ;;  %s406_s28 = smov 96  }
  0xb4   : > { %v174_v38 = vld [vmem:[%s573_s4] sm:$0xff]  ;;  %224 = vrot.lane.b32.xlu0 %v323_v36, %s404_s22  ;;  %246 = vrot.lane.b32.xlu2 %v324_v37, %s405_s26  ;;  %v171_v39 = vld [vmem:[#allocation4] sm:$0x1]  ;;  %s256_s1 = scalar_lea.vmem [#allocation10], %s399_s3  ;;  %s170_s3 = sadd.s32 1, %s399_s3  }
  0xb5   : > { %194 = vmatpush.msra.mxu0 %v176_v34  ;;  %p167_p7 = scmp.ge.s32.totalorder %s170_s3, 4  }
  0xb6   :  { %s265_s29 = sshll.u32 (%p167_p7), %s577_s8, 4  ;;  %s407_s30 = smov (%p167_p7), [#allocation10]   ;;  %s266_s29 = int_to_ptr.hbm [resolvable:$true] %s265_s29 }
  0xb7   : > { %195 = vmatpush.msra.mxu0 %v175_v35  ;;  %s263_s9 = sshll.u32 (%p167_p7), %s407_s30, 4  ;;  %s264_s9 = int_to_ptr.vmem [resolvable:$true] %s263_s9 }
  0xb8   : > { %v173_v43 = vld [vmem:[%s172_s27] sm:$0x1] }
  0xb9   : > { %196 = vmatpush.msra.mxu0 %v174_v38 }
  0xba   : > { %297 = vmatmul.msk.f32.vlgmr.msra.gmra.mxu0 %vm55_vm0, %v171_v39 }
 0x10e   : > { %v247_v63 = vpop.permute.xlu2 %246 }
 0x126   : > { %v225_v40 = vpop.permute.xlu0 %224 }
 0x137   : > { %v198_v41 = vpop.f32.mrf.mxu0 }
 0x138   : > { %v227_v42 = vadd.f32 %v225_v40, %v198_v41  ;;  %v201_v44 = vadd.f32 %v198_v41, %v173_v43 }
 0x13a   : > { %229 = vrot.lane.b32.xlu0 %v227_v42, %s404_s22  ;;  %v298_v45 = vmul.f32 -1.442695, %v201_v44 }
 0x13c   : > { %325 = vpow2.f32 %v298_v45 }
 0x142   : > { %v326_v46 = vpop.eup %325 }
 0x143   : > { %v205_v47 = vadd.f32 1.0, %v326_v46 }
 0x145   : > { %327 = vrcp.f32 %v205_v47  ;;  %v217_v53 = vand.u32 2147483648, %v205_v47  ;;  %vm211_vm10 = vweird.f32 %v205_v47  ;;  %v215_v54 = vand.u32 2147483647, %v205_v47 }
 0x147   : > { %v218_v56 = vor.u32 1.1754944e-38, %v217_v53  ;;  %vm216_vm12 = vcmp.eq.f32.partialorder %v215_v54, 8.507059e+37 }
 0x14b   : > { %v328_v48 = vpop.eup %327 }
 0x14c   : > { %v207_v49 = vmul.f32 %v328_v48, %v205_v47  ;;  %vm212_vm9 = vweird.f32 %v328_v48 }
 0x14d   : > { %vm213_vm11 = vmor %vm211_vm10, %vm212_vm9 }
 0x14e   : > { %v208_v50 = vsub.f32 1.0, %v207_v49 }
 0x150   : > { %v209_v51 = vmul.f32 %v328_v48, %v208_v50 }
 0x152   : > { %v210_v52 = vadd.f32 %v328_v48, %v209_v51 }
 0x154   : > { %v214_v55 = vsel %vm213_vm11, %v328_v48, %v210_v52 }
 0x155   : > { %v219_v57 = vsel %vm216_vm12, %v218_v56, %v214_v55 }
 0x156   : > { %v239_v0 = vsub.f32 1.0, %v219_v57  ;;  %v249_v2 = vmul.f32 %v247_v63, %v219_v57 }
 0x1ac   : > { %v230_v58 = vpop.permute.xlu0 %229 }
 0x1ad   : > { %v232_v59 = vmul.f32 %v230_v58, %v219_v57 }
 0x1af   : > { %234 = vrot.lane.b32.xlu1 %v232_v59, %s404_s22 }
 0x221   : > { %v235_v60 = vpop.permute.xlu1 %234 }
 0x222   : > { %v237_v61 = vadd.f32 %v235_v60, %v173_v43 }
 0x224   : > { %329 = vtanh.f32 %v237_v61 }
 0x22a   : > { %v330_v62 = vpop.eup %329 }
 0x22b   : > { %241 = vrot.lane.b32.xlu1 %v330_v62, %s406_s28 }
 0x29d   : > { %v242_v1 = vpop.permute.xlu1 %241 }
 0x29e   : > { %v244_v3 = vmul.f32 %v242_v1, %v239_v0 }
 0x2a0   : > { %v250_v4 = vadd.f32 %v249_v2, %v244_v3 }
 0x2a2   : > { %252 = vrot.lane.b32.xlu2 %v250_v4, %s406_s28 }
 0x2fa   :  { %169 = sbr.rel (!%p167_p7) target bundleno = 178 (0xb2), region = 94 }
 0x2fc   : > { %v253_v5 = vpop.permute.xlu2 %252 }
 0x2fd   : > { %255 = vst.msk [vmem:[#allocation4] sm:$0x1] %vm126_vm7, %v253_v5 }
 0x2fe   : > { %257 = vst.msk [vmem:[%s256_s1] sm:$0x1] %vm126_vm7, %v253_v5 }
 0x2ff   :  { %268 = dma.vmem_to_hbm [thread:$0]  %s264_s9, 128, %s266_s29, [#allocation6]  }
 0x300   :  { %391 = dma.done.wait [#allocation6], 128  }
 0x301   :  { %392 = vsyncadd [#allocation6], 4294967168 }
 0x302   :  { %273 = vsyncpa [#allocation6], 1 }
 0x303   :  { %274 = vsyncpa [#allocation7], 1 }
 0x304   :  { %275 = vsyncpa [#allocation9], 1 }

</bundles_post_ra>
